<compile_context>
chip_gen: v5e
topology: v5e:2x2
jax: 0.10.0
libtpu: 0.0.40
codegen_flags: <defaults>
</compile_context>

<pallas_src>
import functools

import jax
import jax.numpy as jnp
from jax.experimental import pallas as pl
from jax.experimental.pallas import tpu as pltpu


def _encoder_head_kernel(feat_ref, w_ref, b_ref, o_ref, *, no_imgnorm, use_abs):
    # feat_ref: (Bblk, D) f32   w_ref: (D, E) bf16   b_ref: (1, E) f32
    # o_ref:    (Bblk, E)
    f = feat_ref[...]
    # Inverse L2 norm of each input row (rsqrt -> EUP slot).  Applied AFTER the
    # matmul: the per-row scale commutes with the linear map (bias added last).
    inv_norm = jax.lax.rsqrt(jnp.sum(f * f, axis=-1, keepdims=True))
    # bf16 MXU matmul on the raw features, f32 accumulation.
    out = jnp.dot(f.astype(w_ref.dtype), w_ref[...],
                  preferred_element_type=jnp.float32)
    out = out * inv_norm + b_ref[...]
    if not no_imgnorm:
        out = out * jax.lax.rsqrt(jnp.sum(out * out, axis=-1, keepdims=True))
    if use_abs:
        out = jnp.abs(out)
    o_ref[...] = out.astype(o_ref.dtype)


def encoder_image_full(features, weight_t, bias, *, no_imgnorm=False,
                       use_abs=False, block_b=None, out_dtype=jnp.float32):
    """Post-CNN head of EncoderImageFull.

    features: (bs, in_features) f32 -- CNN feature vectors (e.g. VGG19 fc7).
    weight_t: (in_features, embed_size)     -- transposed nn.Linear weight.
    bias:     (embed_size,).
    Returns (bs, embed_size) in `out_dtype` (f32 by default; bf16 halves the
    output store traffic if downstream accepts it).
    """
    bs, in_dim = features.shape
    k_dim, embed_dim = weight_t.shape
    assert k_dim == in_dim and bias.shape == (embed_dim,)

    features = features.astype(jnp.float32)
    w_bf16 = weight_t.astype(jnp.bfloat16)          # MXU-native, half DMA/VMEM
    bias2 = bias.astype(jnp.float32).reshape(1, embed_dim)
    out_itemsize = jnp.dtype(out_dtype).itemsize

    if block_b is None:
        if bs <= 256:
            block_b = bs                 # single grid step, no padding needed
        else:
            # Size the batch tile from a v7x-safe VMEM budget: resident bf16
            # weight + double-buffered f32 input blocks + output blocks.
            budget = 40 * 1024 * 1024
            resident = in_dim * embed_dim * 2 + embed_dim * 4
            per_row = 2 * in_dim * 4 + 2 * embed_dim * out_itemsize
            block_b = int(max(64, min(512, (budget - resident) // per_row)))
            block_b = max(8, (block_b // 8) * 8)     # sublane multiple
    n_blocks = pl.cdiv(bs, block_b)

    kernel = functools.partial(_encoder_head_kernel,
                               no_imgnorm=no_imgnorm, use_abs=use_abs)

    def call(single_buffer_weights):
        w_mode = ({"pipeline_mode": pl.Buffered(1)}
                  if single_buffer_weights else {})
        n_w_buf = 1 if single_buffer_weights else 2
        vmem_bytes = (n_w_buf * (in_dim * embed_dim * 2 + embed_dim * 4)
                      + 2 * block_b * in_dim * 4
                      + 2 * block_b * embed_dim * out_itemsize)
        vmem_limit = int(min(64 << 20, max(16 << 20,
                                           vmem_bytes * 1.25 + (2 << 20))))
        return pl.pallas_call(
            kernel,
            out_shape=jax.ShapeDtypeStruct((bs, embed_dim), out_dtype),
            grid_spec=pltpu.PrefetchScalarGridSpec(
                num_scalar_prefetch=0,
                grid=(n_blocks,),
                in_specs=[
                    pl.BlockSpec((block_b, in_dim), lambda b: (b, 0)),
                    # Constant index_map: weight & bias stay VMEM-resident
                    # across grid steps (no per-step re-DMA).
                    pl.BlockSpec((in_dim, embed_dim), lambda b: (0, 0),
                                 **w_mode),
                    pl.BlockSpec((1, embed_dim), lambda b: (0, 0), **w_mode),
                ],
                out_specs=pl.BlockSpec((block_b, embed_dim), lambda b: (b, 0)),
            ),
            compiler_params=pltpu.CompilerParams(
                dimension_semantics=("parallel",),
                vmem_limit_bytes=vmem_limit),
        )(features, w_bf16, bias2)

    try:
        return call(True)
    except Exception:
        # pl.Buffered(1) not accepted by this jax/backend: default buffering.
        return call(False)


def reference(features, weight_t, bias, *, no_imgnorm=False, use_abs=False):
    def l2norm(x):
        return x / jnp.sqrt(jnp.sum(x * x, axis=-1, keepdims=True))
    f = l2norm(features)
    out = jnp.einsum("bd,de->be", f, weight_t) + bias
    if not no_imgnorm:
        out = l2norm(out)
    if use_abs:
        out = jnp.abs(out)
    return out


if __name__ == "__main__":
    # TODO(synk): the pretrained VGG19/ResNet backbone (self.cnn) is not
    # translated; the kernel consumes precomputed CNN feature vectors.
    bs, in_dim, embed_dim = 16, 256, 128

    key = jax.random.PRNGKey(0)
    k1, k2, k3 = jax.random.split(key, 3)

    # Stand-in for CNN features (VGG fc7 activations are ReLU outputs, so keep
    # them nonnegative and strictly nonzero per row).
    features = jax.nn.relu(
        jax.random.normal(k1, (bs, in_dim), jnp.float32)) + 0.1

    # Xavier init of fc (as in init_weights), stored transposed (in, out).
    r = (6.0 ** 0.5) / ((in_dim + embed_dim) ** 0.5)
    weight_t = jax.random.uniform(k2, (in_dim, embed_dim), jnp.float32, -r, r)
    bias = jax.random.uniform(k3, (embed_dim,), jnp.float32, -r, r)

    # bs=16 <= 256 -> single grid step, no host-side padding, full-batch tile.
    out = encoder_image_full(features, weight_t, bias)
    out = jax.block_until_ready(out)

    ref = reference(features, weight_t, bias)
    assert out.shape == (bs, embed_dim)
    max_err = float(jnp.max(jnp.abs(out - ref)))
    assert jnp.allclose(out, ref, atol=3e-3, rtol=3e-3), max_err
    print("KERNEL_OK")
</pallas_src>

<mosaic_0001>
module attributes {stable_mosaic.version = 11 : i64} {
  func.func @_encoder_head_kernel(%arg0: i32, %arg1: memref<16x256xf32, #tpu.memory_space<vmem>>, %arg2: memref<256x128xbf16, #tpu.memory_space<vmem>>, %arg3: memref<1x128xf32, #tpu.memory_space<vmem>>, %arg4: memref<16x128xf32, #tpu.memory_space<vmem>>) attributes {dimension_semantics = [#tpu.dimension_semantics<parallel>], iteration_bounds = array<i64: 1>, scalar_prefetch = 0 : i64, scratch_operands = 0 : i64, tpu.core_type = #tpu.core_type<tc>, window_params = [{transform_indices = @transform_0, window_bounds = array<i64: 16, 256>}, {pipeline_mode = #tpu.pipeline_mode<synchronous>, transform_indices = @transform_1, window_bounds = array<i64: 256, 128>}, {pipeline_mode = #tpu.pipeline_mode<synchronous>, transform_indices = @transform_2, window_bounds = array<i64: 1, 128>}, {transform_indices = @transform_3, window_bounds = array<i64: 16, 128>}]} {
    %c0 = arith.constant 0 : index
    %c0_0 = arith.constant 0 : index
    %0 = vector.load %arg1[%c0, %c0_0] : memref<16x256xf32, #tpu.memory_space<vmem>>, vector<16x256xf32>
    %1 = arith.mulf %0, %0 : vector<16x256xf32>
    %cst = arith.constant dense<0.000000e+00> : vector<16xf32>
    %2 = vector.multi_reduction <add>, %1, %cst [1] : vector<16x256xf32> to vector<16xf32>
    %3 = vector.shape_cast %2 : vector<16xf32> to vector<16x1xf32>
    %4 = math.rsqrt %3 : vector<16x1xf32>
    %5 = arith.truncf %0 : vector<16x256xf32> to vector<16x256xbf16>
    %c0_1 = arith.constant 0 : index
    %c0_2 = arith.constant 0 : index
    %6 = vector.load %arg2[%c0_1, %c0_2] : memref<256x128xbf16, #tpu.memory_space<vmem>>, vector<256x128xbf16>
    %cst_3 = arith.constant dense<0.000000e+00> : vector<16x128xf32>
    %7 = tpu.matmul %5, %6, %cst_3 {dimension_numbers = #tpu.dot_dimension_numbers<[1], [0], [0], [1], [0, 0, 1, 1], [], []>} : vector<16x256xbf16>, vector<256x128xbf16>, vector<16x128xf32> -> vector<16x128xf32>
    %8 = vector.broadcast %4 : vector<16x1xf32> to vector<16x128xf32>
    %9 = arith.mulf %7, %8 : vector<16x128xf32>
    %c0_4 = arith.constant 0 : index
    %c0_5 = arith.constant 0 : index
    %10 = vector.load %arg3[%c0_4, %c0_5] : memref<1x128xf32, #tpu.memory_space<vmem>>, vector<1x128xf32>
    %11 = vector.broadcast %10 : vector<1x128xf32> to vector<16x128xf32>
    %12 = arith.addf %9, %11 : vector<16x128xf32>
    %13 = arith.mulf %12, %12 : vector<16x128xf32>
    %cst_6 = arith.constant dense<0.000000e+00> : vector<16xf32>
    %14 = vector.multi_reduction <add>, %13, %cst_6 [1] : vector<16x128xf32> to vector<16xf32>
    %15 = vector.shape_cast %14 : vector<16xf32> to vector<16x1xf32>
    %16 = math.rsqrt %15 : vector<16x1xf32>
    %17 = vector.broadcast %16 : vector<16x1xf32> to vector<16x128xf32>
    %18 = arith.mulf %12, %17 : vector<16x128xf32>
    %c0_7 = arith.constant 0 : index
    %c0_8 = arith.constant 0 : index
    %19 = vector.load %arg4[%c0_7, %c0_8] : memref<16x128xf32, #tpu.memory_space<vmem>>, vector<16x128xf32>
    tpu.vector_store %arg4[%c0_7, %c0_8], %18 {strides = array<i32>} : memref<16x128xf32, #tpu.memory_space<vmem>>, vector<16x128xf32>,
    return
  }
  func.func @transform_0(%arg0: i32) -> (i32, i32) {
    %c0_i32 = arith.constant 0 : i32
    %c0_i32_0 = arith.constant 0 : i32
    return %arg0, %c0_i32 : i32, i32
  }
  func.func @transform_1(%arg0: i32) -> (i32, i32) {
    %c0_i32 = arith.constant 0 : i32
    %c0_i32_0 = arith.constant 0 : i32
    %c0_i32_1 = arith.constant 0 : i32
    return %c0_i32, %c0_i32_0 : i32, i32
  }
  func.func @transform_2(%arg0: i32) -> (i32, i32) {
    %c0_i32 = arith.constant 0 : i32
    %c0_i32_0 = arith.constant 0 : i32
    %c0_i32_1 = arith.constant 0 : i32
    return %c0_i32, %c0_i32_0 : i32, i32
  }
  func.func @transform_3(%arg0: i32) -> (i32, i32) {
    %c0_i32 = arith.constant 0 : i32
    %c0_i32_0 = arith.constant 0 : i32
    return %arg0, %c0_i32 : i32, i32
  }
}

module attributes {stable_mosaic.version = 11 : i64} {
  func.func @_encoder_head_kernel(%arg0: i32, %arg1: memref<16x256xf32, #tpu.memory_space<vmem>>, %arg2: memref<256x128xbf16, #tpu.memory_space<vmem>>, %arg3: memref<1x128xf32, #tpu.memory_space<vmem>>, %arg4: memref<16x128xf32, #tpu.memory_space<vmem>>) attributes {dimension_semantics = [#tpu.dimension_semantics<parallel>], iteration_bounds = array<i64: 1>, scalar_prefetch = 0 : i64, scratch_operands = 0 : i64, tpu.core_type = #tpu.core_type<tc>, window_params = [{transform_indices = @transform_0, window_bounds = array<i64: 16, 256>}, {pipeline_mode = #tpu.pipeline_mode<synchronous>, transform_indices = @transform_1, window_bounds = array<i64: 256, 128>}, {pipeline_mode = #tpu.pipeline_mode<synchronous>, transform_indices = @transform_2, window_bounds = array<i64: 1, 128>}, {transform_indices = @transform_3, window_bounds = array<i64: 16, 128>}]} {
    %c0 = arith.constant 0 : index
    %c0_0 = arith.constant 0 : index
    %0 = vector.load %arg1[%c0, %c0_0] : memref<16x256xf32, #tpu.memory_space<vmem>>, vector<16x256xf32>
    %1 = arith.mulf %0, %0 : vector<16x256xf32>
    %cst = arith.constant dense<0.000000e+00> : vector<16xf32>
    %2 = vector.multi_reduction <add>, %1, %cst [1] : vector<16x256xf32> to vector<16xf32>
    %3 = vector.shape_cast %2 : vector<16xf32> to vector<16x1xf32>
    %4 = math.rsqrt %3 : vector<16x1xf32>
    %5 = arith.truncf %0 : vector<16x256xf32> to vector<16x256xbf16>
    %c0_1 = arith.constant 0 : index
    %c0_2 = arith.constant 0 : index
    %6 = vector.load %arg2[%c0_1, %c0_2] : memref<256x128xbf16, #tpu.memory_space<vmem>>, vector<256x128xbf16>
    %cst_3 = arith.constant dense<0.000000e+00> : vector<16x128xf32>
    %7 = tpu.matmul %5, %6, %cst_3 {dimension_numbers = #tpu.dot_dimension_numbers<[1], [0], [0], [1], [0, 0, 1, 1], [], []>} : vector<16x256xbf16>, vector<256x128xbf16>, vector<16x128xf32> -> vector<16x128xf32>
    %8 = vector.broadcast %4 : vector<16x1xf32> to vector<16x128xf32>
    %9 = arith.mulf %7, %8 : vector<16x128xf32>
    %c0_4 = arith.constant 0 : index
    %c0_5 = arith.constant 0 : index
    %10 = vector.load %arg3[%c0_4, %c0_5] : memref<1x128xf32, #tpu.memory_space<vmem>>, vector<1x128xf32>
    %11 = vector.broadcast %10 : vector<1x128xf32> to vector<16x128xf32>
    %12 = arith.addf %9, %11 : vector<16x128xf32>
    %13 = arith.mulf %12, %12 : vector<16x128xf32>
    %cst_6 = arith.constant dense<0.000000e+00> : vector<16xf32>
    %14 = vector.multi_reduction <add>, %13, %cst_6 [1] : vector<16x128xf32> to vector<16xf32>
    %15 = vector.shape_cast %14 : vector<16xf32> to vector<16x1xf32>
    %16 = math.rsqrt %15 : vector<16x1xf32>
    %17 = vector.broadcast %16 : vector<16x1xf32> to vector<16x128xf32>
    %18 = arith.mulf %12, %17 : vector<16x128xf32>
    %c0_7 = arith.constant 0 : index
    %c0_8 = arith.constant 0 : index
    %19 = vector.load %arg4[%c0_7, %c0_8] : memref<16x128xf32, #tpu.memory_space<vmem>>, vector<16x128xf32>
    tpu.vector_store %arg4[%c0_7, %c0_8], %18 {strides = array<i32>} : memref<16x128xf32, #tpu.memory_space<vmem>>, vector<16x128xf32>,
    return
  }
  func.func @transform_0(%arg0: i32) -> (i32, i32) {
    %c0_i32 = arith.constant 0 : i32
    %c0_i32_0 = arith.constant 0 : i32
    return %arg0, %c0_i32 : i32, i32
  }
  func.func @transform_1(%arg0: i32) -> (i32, i32) {
    %c0_i32 = arith.constant 0 : i32
    %c0_i32_0 = arith.constant 0 : i32
    %c0_i32_1 = arith.constant 0 : i32
    return %c0_i32, %c0_i32_0 : i32, i32
  }
  func.func @transform_2(%arg0: i32) -> (i32, i32) {
    %c0_i32 = arith.constant 0 : i32
    %c0_i32_0 = arith.constant 0 : i32
    %c0_i32_1 = arith.constant 0 : i32
    return %c0_i32, %c0_i32_0 : i32, i32
  }
  func.func @transform_3(%arg0: i32) -> (i32, i32) {
    %c0_i32 = arith.constant 0 : i32
    %c0_i32_0 = arith.constant 0 : i32
    return %arg0, %c0_i32 : i32, i32
  }
}

</mosaic_0001>

<bundles_post_ra>
// kernel: tpu_custom_call.1
= control target key start
LH: loop header
LB: loop body
LE: loop exit
PB: predicated region body
PF: predicated region fallthrough
CT: control target
= control target key end

     0   :  { %8 = vsyncpa [#allocation3], 0  ;;  %s514_s0 = inlined_call_operand.hbm [shape: f32[16,256], index: 0, kind: input, shape index: {}]   ;;  %s515_s1 = inlined_call_operand.hbm [shape: bf16[256,128], index: 1, kind: input, shape index: {}]   ;;  %s516_s2 = inlined_call_operand.vmem [shape: f32[1,128], index: 2, kind: input, shape index: {}]   ;;  %s517_s3 = inlined_call_operand.hbm [shape: f32[16,128], index: 3, kind: output, shape index: {}]  }
   0x1   :  { %9 = vsyncpa [#allocation6], 0 }
   0x2   :  { %10 = vsyncpa [#allocation4], 0  ;;  %s15_s14 = sshll.u32 %s514_s0, 4  ;;  %s473_s15 = smov [#allocation2]   ;;  %s16_s14 = int_to_ptr.hbm [resolvable:$true] %s15_s14 }
   0x3   :  { %s17_s16 = sshll.u32 %s473_s15, 4  ;;  %s28_s19 = sshll.u32 %s515_s1, 4  ;;  %s18_s16 = int_to_ptr.vmem [resolvable:$true] %s17_s16  ;;  %s29_s19 = int_to_ptr.hbm [resolvable:$true] %s28_s19 }
   0x4   :  { %s474_s20 = smov 256   ;;  %s475_s21 = smov 16  }
   0x5   :  { %23 = dma.hbm_to_vmem [thread:$0]  %s16_s14, 512, %s18_s16, [#allocation3], %s474_s20, %s474_s20, %s475_s21  }
   0x6   :  { %s476_s22 = smov [#allocation5]   ;;  %s477_s24 = smov 64  }
   0x7   :  { %s30_s23 = sshll.u32 %s476_s22, 4  ;;  %s478_s25 = smov 4   ;;  %s31_s23 = int_to_ptr.vmem [resolvable:$true] %s30_s23 }
   0x8   :  { %36 = dma.hbm_to_vmem [thread:$0]  %s29_s19, 2048, %s31_s23, [#allocation6], %s477_s24, %s477_s24, %s478_s25  }
   0x9   :  { %467 = dma.done.wait [#allocation3], 512  }
   0xa   :  { %468 = vsyncadd [#allocation3], 4294966784 }
   0xb   :  { %469 = dma.done.wait [#allocation6], 2048  }
   0xc   :  { %470 = vsyncadd [#allocation6], 4294965248  ;;  %v368_v0 = vld [vmem:[#allocation5 + $0x38] sm:$0xff]  ;;  %v367_v2 = vld [vmem:[#allocation5 + $0x30] sm:$0xff]  ;;  %s283_s29 = sshll.u32 %s517_s3, 4  ;;  %s480_s30 = smov 128   ;;  %s284_s29 = int_to_ptr.hbm [resolvable:$true] %s283_s29 }
   0xd   :  { %v376_v1 = vld [vmem:[#allocation5 + $0x78] sm:$0xff]  ;;  %211 = vmatpush.bf16.msra.mxu0 %v368_v0  ;;  %v375_v3 = vld [vmem:[#allocation5 + $0x70] sm:$0xff]  ;;  %v47_v4 = vld [vmem:[#allocation2] sm:$0xff]  ;;  %s481_s4 = smov 8  }
   0xe   :  { %225 = vmatpush.bf16.msra.mxu1 %v376_v1  ;;  %v48_v5 = vld [vmem:[#allocation2 + $0x8] sm:$0xff]  ;;  %v51_v6 = vmul.f32 %v47_v4, %v47_v4  ;;  %v49_v8 = vld [vmem:[#allocation2 + $0x10] sm:$0xff]  ;;  %v50_v9 = vld [vmem:[#allocation2 + $0x18] sm:$0xff] }
   0xf   :  { %v52_v7 = vmul.f32 %v48_v5, %v48_v5  ;;  %v366_v11 = vld [vmem:[#allocation5 + $0x28] sm:$0xff]  ;;  %v53_v13 = vmul.f32 %v49_v8, %v49_v8  ;;  %v54_v14 = vmul.f32 %v50_v9, %v50_v9  ;;  %v365_v15 = vld [vmem:[#allocation5 + $0x20] sm:$0xff]  ;;  %v364_v18 = vld [vmem:[#allocation5 + $0x18] sm:$0xff]  ;;  %v81_v26 = vpack.c.bf16 %v49_v8, %v47_v4 }
  0x10   :  { %v374_v12 = vld [vmem:[#allocation5 + $0x68] sm:$0xff]  ;;  %v373_v16 = vld [vmem:[#allocation5 + $0x60] sm:$0xff]  ;;  %v372_v19 = vld [vmem:[#allocation5 + $0x58] sm:$0xff]  ;;  %v82_v27 = vpack.c.bf16 %v50_v9, %v48_v5 }
  0x11   :  { %v55_v10 = vadd.f32 %v52_v7, %v51_v6  ;;  %212 = vmatpush.bf16.msra.mxu0 %v367_v2  ;;  %v58_v17 = vadd.f32 %v54_v14, %v53_v13  ;;  %v363_v20 = vld [vmem:[#allocation5 + $0x10] sm:$0xff]  ;;  %v362_v22 = vld [vmem:[#allocation5 + $0x8] sm:$0xff]  ;;  %v361_v24 = vld [vmem:[#allocation5] sm:$0xff] }
  0x12   :  { %226 = vmatpush.bf16.msra.mxu1 %v375_v3  ;;  %v371_v21 = vld [vmem:[#allocation5 + $0x50] sm:$0xff]  ;;  %v370_v23 = vld [vmem:[#allocation5 + $0x48] sm:$0xff]  ;;  %v369_v25 = vld [vmem:[#allocation5 + $0x40] sm:$0xff] }
  0x13   :  { %56 = vadd.xlane.f32.xlu0 %v55_v10  ;;  %v386_v43 = vld [vmem:[%s516_s2] ss:$0 sm:$0xff]  ;;  %s479_s2 = smov [#allocation7]  }
  0x14   :  { %s281_s26 = sshll.u32 %s479_s2, 4  ;;  %s282_s26 = int_to_ptr.vmem [resolvable:$true] %s281_s26 }
  0x15   :  { %213 = vmatpush.bf16.msra.mxu0 %v366_v11 }
  0x16   :  { %227 = vmatpush.bf16.msra.mxu1 %v374_v12 }
  0x19   :  { %214 = vmatpush.bf16.msra.mxu0 %v365_v15 }
  0x1a   :  { %228 = vmatpush.bf16.msra.mxu1 %v373_v16 }
  0x1b   :  { %59 = vadd.xlane.f32.xlu0 %v58_v17 }
  0x1d   :  { %215 = vmatpush.bf16.msra.mxu0 %v364_v18 }
  0x1e   :  { %229 = vmatpush.bf16.msra.mxu1 %v372_v19 }
  0x21   :  { %216 = vmatpush.bf16.msra.mxu0 %v363_v20 }
  0x22   :  { %230 = vmatpush.bf16.msra.mxu1 %v371_v21 }
  0x25   :  { %217 = vmatpush.bf16.msra.mxu0 %v362_v22 }
  0x26   :  { %231 = vmatpush.bf16.msra.mxu1 %v370_v23 }
  0x29   :  { %218 = vmatpush.bf16.msra.mxu0 %v361_v24 }
  0x2a   :  { %232 = vmatpush.bf16.msra.mxu1 %v369_v25 }
  0x2c   :  { %219 = vmatmul.bf16.vlgmr.msra.gmra.mxu0 %v81_v26 }
  0x2d   :  { %233 = vmatmul.bf16.vlgmr.msra.gmra.mxu1 %v82_v27 }
  0x86   :  { %v57_v28 = vpop.xlane.xlu0 %56 }
  0x87   :  { %387 = vrsqrt.f32 %v57_v28  ;;  %vm67_vm0 = vweird.f32 %v57_v28 }
  0x8d   :  { %v388_v30 = vpop.eup %387 }
  0x8e   :  { %v60_v29 = vpop.xlane.xlu0 %59  ;;  %v62_v31 = vmul.f32 %v388_v30, %v57_v28  ;;  %vm68_vm1 = vweird.f32 %v388_v30 }
  0x8f   :  { %389 = vrsqrt.f32 %v60_v29  ;;  %vm69_vm2 = vmor %vm67_vm0, %vm68_vm1  ;;  %vm77_vm3 = vweird.f32 %v60_v29 }
  0x90   :  { %v63_v32 = vmul.f32 %v388_v30, %v62_v31 }
  0x92   :  { %v64_v34 = vmul.f32 0.5, %v63_v32 }
  0x94   :  { %v65_v36 = vsub.f32 1.5, %v64_v34 }
  0x95   :  { %v390_v33 = vpop.eup %389 }
  0x96   :  { %v72_v35 = vmul.f32 %v390_v33, %v60_v29  ;;  %v66_v39 = vmul.f32 %v388_v30, %v65_v36  ;;  %vm78_vm4 = vweird.f32 %v390_v33 }
  0x97   :  { %vm79_vm5 = vmor %vm77_vm3, %vm78_vm4 }
  0x98   :  { %v73_v37 = vmul.f32 %v390_v33, %v72_v35  ;;  %v70_v45 = vsel %vm69_vm2, %v388_v30, %v66_v39 }
  0x9a   :  { %v74_v38 = vmul.f32 0.5, %v73_v37 }
  0x9c   :  { %v75_v44 = vsub.f32 1.5, %v74_v38 }
  0x9e   :  { %v76_v48 = vmul.f32 %v390_v33, %v75_v44 }
  0xa0   :  { %v80_v53 = vsel %vm79_vm5, %v390_v33, %v76_v48 }
  0xa9   :  { %v220_v40 = vpop.f32.mrf.mxu0 }
  0xaa   :  { %v234_v41 = vpop.f32.mrf.mxu1 }
  0xab   :  { %v235_v42 = vadd.f32 %v234_v41, %v220_v40 }
  0xad   :  { %v239_v46 = vmul.f32 %v235_v42, %v70_v45 }
  0xaf   :  { %v245_v47 = vadd.f32 %v386_v43, %v239_v46 }
  0xb1   :  { %v247_v49 = vmul.f32 %v245_v47, %v245_v47  ;;  %v222_v50 = vpop.f32.mrf.mxu0 }
  0xb2   :  { %v236_v51 = vpop.f32.mrf.mxu1 }
  0xb3   :  { %v237_v52 = vadd.f32 %v236_v51, %v222_v50  ;;  %249 = vadd.xlane.f32.xlu1 %v247_v49 }
  0xb5   :  { %v240_v54 = vmul.f32 %v237_v52, %v80_v53 }
  0xb7   :  { %v246_v55 = vadd.f32 %v386_v43, %v240_v54 }
  0xb9   :  { %v248_v56 = vmul.f32 %v246_v55, %v246_v55 }
  0xbb   :  { %251 = vadd.xlane.f32.xlu1 %v248_v56 }
 0x126   :  { %v250_v57 = vpop.xlane.xlu1 %249 }
 0x127   :  { %391 = vrsqrt.f32 %v250_v57  ;;  %vm259_vm7 = vweird.f32 %v250_v57 }
 0x12d   :  { %v392_v58 = vpop.eup %391 }
 0x12e   :  { %v254_v59 = vmul.f32 %v392_v58, %v250_v57  ;;  %v252_v60 = vpop.xlane.xlu1 %251  ;;  %vm260_vm6 = vweird.f32 %v392_v58 }
 0x12f   :  { %393 = vrsqrt.f32 %v252_v60  ;;  %vm261_vm8 = vmor %vm259_vm7, %vm260_vm6  ;;  %vm269_vm10 = vweird.f32 %v252_v60 }
 0x130   :  { %v255_v61 = vmul.f32 %v392_v58, %v254_v59 }
 0x132   :  { %v256_v62 = vmul.f32 0.5, %v255_v61 }
 0x134   :  { %v257_v63 = vsub.f32 1.5, %v256_v62 }
 0x135   :  { %v394_v0 = vpop.eup %393 }
 0x136   :  { %v258_v1 = vmul.f32 %v392_v58, %v257_v63  ;;  %v264_v2 = vmul.f32 %v394_v0, %v252_v60  ;;  %vm270_vm9 = vweird.f32 %v394_v0 }
 0x137   :  { %vm271_vm11 = vmor %vm269_vm10, %vm270_vm9 }
 0x138   :  { %v262_v3 = vsel %vm261_vm8, %v392_v58, %v258_v1  ;;  %v265_v4 = vmul.f32 %v394_v0, %v264_v2 }
 0x139   :  { %v273_v5 = vmul.f32 %v262_v3, %v245_v47 }
 0x13a   :  { %v266_v6 = vmul.f32 0.5, %v265_v4 }
 0x13b   :  { %275 = vst [vmem:[#allocation7] sm:$0xff] %v273_v5 }
 0x13c   :  { %v267_v7 = vsub.f32 1.5, %v266_v6 }
 0x13e   :  { %v268_v8 = vmul.f32 %v394_v0, %v267_v7 }
 0x140   :  { %v272_v9 = vsel %vm271_vm11, %v394_v0, %v268_v8 }
 0x141   :  { %v274_v10 = vmul.f32 %v272_v9, %v246_v55 }
 0x143   :  { %276 = vst [vmem:[#allocation7 + $0x8] sm:$0xff] %v274_v10 }
 0x144   :  { %289 = dma.vmem_to_hbm [thread:$0]  %s282_s26, 256, %s284_s29, [#allocation4], %s480_s30, %s480_s30, %s481_s4  }
 0x145   :  { %471 = dma.done.wait [#allocation4], 256  }
 0x146   :  { %472 = vsyncadd [#allocation4], 4294967040 }
 0x147   :  { %294 = vsyncpa [#allocation3], 1 }
 0x148   :  { %295 = vsyncpa [#allocation6], 1 }
 0x149   :  { %296 = vsyncpa [#allocation4], 1 }

// kernel: tpu_custom_call.1
= control target key start
LH: loop header
LB: loop body
LE: loop exit
PB: predicated region body
PF: predicated region fallthrough
CT: control target
= control target key end

     0   :  { %8 = vsyncpa [#allocation3], 0  ;;  %s514_s0 = inlined_call_operand.hbm [shape: f32[16,256], index: 0, kind: input, shape index: {}]   ;;  %s515_s1 = inlined_call_operand.hbm [shape: bf16[256,128], index: 1, kind: input, shape index: {}]   ;;  %s516_s2 = inlined_call_operand.vmem [shape: f32[1,128], index: 2, kind: input, shape index: {}]   ;;  %s517_s3 = inlined_call_operand.hbm [shape: f32[16,128], index: 3, kind: output, shape index: {}]  }
   0x1   :  { %9 = vsyncpa [#allocation6], 0 }
   0x2   :  { %10 = vsyncpa [#allocation4], 0  ;;  %s15_s14 = sshll.u32 %s514_s0, 4  ;;  %s473_s15 = smov [#allocation2]   ;;  %s16_s14 = int_to_ptr.hbm [resolvable:$true] %s15_s14 }
   0x3   :  { %s17_s16 = sshll.u32 %s473_s15, 4  ;;  %s28_s19 = sshll.u32 %s515_s1, 4  ;;  %s18_s16 = int_to_ptr.vmem [resolvable:$true] %s17_s16  ;;  %s29_s19 = int_to_ptr.hbm [resolvable:$true] %s28_s19 }
   0x4   :  { %s474_s20 = smov 256   ;;  %s475_s21 = smov 16  }
   0x5   :  { %23 = dma.hbm_to_vmem [thread:$0]  %s16_s14, 512, %s18_s16, [#allocation3], %s474_s20, %s474_s20, %s475_s21  }
   0x6   :  { %s476_s22 = smov [#allocation5]   ;;  %s477_s24 = smov 64  }
   0x7   :  { %s30_s23 = sshll.u32 %s476_s22, 4  ;;  %s478_s25 = smov 4   ;;  %s31_s23 = int_to_ptr.vmem [resolvable:$true] %s30_s23 }
   0x8   :  { %36 = dma.hbm_to_vmem [thread:$0]  %s29_s19, 2048, %s31_s23, [#allocation6], %s477_s24, %s477_s24, %s478_s25  }
   0x9   :  { %467 = dma.done.wait [#allocation3], 512  }
   0xa   :  { %468 = vsyncadd [#allocation3], 4294966784 }
   0xb   :  { %469 = dma.done.wait [#allocation6], 2048  }
   0xc   :  { %470 = vsyncadd [#allocation6], 4294965248  ;;  %v368_v0 = vld [vmem:[#allocation5 + $0x38] sm:$0xff]  ;;  %v367_v2 = vld [vmem:[#allocation5 + $0x30] sm:$0xff]  ;;  %s283_s29 = sshll.u32 %s517_s3, 4  ;;  %s480_s30 = smov 128   ;;  %s284_s29 = int_to_ptr.hbm [resolvable:$true] %s283_s29 }
   0xd   :  { %v376_v1 = vld [vmem:[#allocation5 + $0x78] sm:$0xff]  ;;  %211 = vmatpush.bf16.msra.mxu0 %v368_v0  ;;  %v375_v3 = vld [vmem:[#allocation5 + $0x70] sm:$0xff]  ;;  %v47_v4 = vld [vmem:[#allocation2] sm:$0xff]  ;;  %s481_s4 = smov 8  }
   0xe   :  { %225 = vmatpush.bf16.msra.mxu1 %v376_v1  ;;  %v48_v5 = vld [vmem:[#allocation2 + $0x8] sm:$0xff]  ;;  %v51_v6 = vmul.f32 %v47_v4, %v47_v4  ;;  %v49_v8 = vld [vmem:[#allocation2 + $0x10] sm:$0xff]  ;;  %v50_v9 = vld [vmem:[#allocation2 + $0x18] sm:$0xff] }
   0xf   :  { %v52_v7 = vmul.f32 %v48_v5, %v48_v5  ;;  %v366_v11 = vld [vmem:[#allocation5 + $0x28] sm:$0xff]  ;;  %v53_v13 = vmul.f32 %v49_v8, %v49_v8  ;;  %v54_v14 = vmul.f32 %v50_v9, %v50_v9  ;;  %v365_v15 = vld [vmem:[#allocation5 + $0x20] sm:$0xff]  ;;  %v364_v18 = vld [vmem:[#allocation5 + $0x18] sm:$0xff]  ;;  %v81_v26 = vpack.c.bf16 %v49_v8, %v47_v4 }
  0x10   :  { %v374_v12 = vld [vmem:[#allocation5 + $0x68] sm:$0xff]  ;;  %v373_v16 = vld [vmem:[#allocation5 + $0x60] sm:$0xff]  ;;  %v372_v19 = vld [vmem:[#allocation5 + $0x58] sm:$0xff]  ;;  %v82_v27 = vpack.c.bf16 %v50_v9, %v48_v5 }
  0x11   :  { %v55_v10 = vadd.f32 %v52_v7, %v51_v6  ;;  %212 = vmatpush.bf16.msra.mxu0 %v367_v2  ;;  %v58_v17 = vadd.f32 %v54_v14, %v53_v13  ;;  %v363_v20 = vld [vmem:[#allocation5 + $0x10] sm:$0xff]  ;;  %v362_v22 = vld [vmem:[#allocation5 + $0x8] sm:$0xff]  ;;  %v361_v24 = vld [vmem:[#allocation5] sm:$0xff] }
  0x12   :  { %226 = vmatpush.bf16.msra.mxu1 %v375_v3  ;;  %v371_v21 = vld [vmem:[#allocation5 + $0x50] sm:$0xff]  ;;  %v370_v23 = vld [vmem:[#allocation5 + $0x48] sm:$0xff]  ;;  %v369_v25 = vld [vmem:[#allocation5 + $0x40] sm:$0xff] }
  0x13   :  { %56 = vadd.xlane.f32.xlu0 %v55_v10  ;;  %v386_v43 = vld [vmem:[%s516_s2] ss:$0 sm:$0xff]  ;;  %s479_s2 = smov [#allocation7]  }
  0x14   :  { %s281_s26 = sshll.u32 %s479_s2, 4  ;;  %s282_s26 = int_to_ptr.vmem [resolvable:$true] %s281_s26 }
  0x15   :  { %213 = vmatpush.bf16.msra.mxu0 %v366_v11 }
  0x16   :  { %227 = vmatpush.bf16.msra.mxu1 %v374_v12 }
  0x19   :  { %214 = vmatpush.bf16.msra.mxu0 %v365_v15 }
  0x1a   :  { %228 = vmatpush.bf16.msra.mxu1 %v373_v16 }
  0x1b   :  { %59 = vadd.xlane.f32.xlu0 %v58_v17 }
  0x1d   :  { %215 = vmatpush.bf16.msra.mxu0 %v364_v18 }
  0x1e   :  { %229 = vmatpush.bf16.msra.mxu1 %v372_v19 }
  0x21   :  { %216 = vmatpush.bf16.msra.mxu0 %v363_v20 }
  0x22   :  { %230 = vmatpush.bf16.msra.mxu1 %v371_v21 }
  0x25   :  { %217 = vmatpush.bf16.msra.mxu0 %v362_v22 }
  0x26   :  { %231 = vmatpush.bf16.msra.mxu1 %v370_v23 }
  0x29   :  { %218 = vmatpush.bf16.msra.mxu0 %v361_v24 }
  0x2a   :  { %232 = vmatpush.bf16.msra.mxu1 %v369_v25 }
  0x2c   :  { %219 = vmatmul.bf16.vlgmr.msra.gmra.mxu0 %v81_v26 }
  0x2d   :  { %233 = vmatmul.bf16.vlgmr.msra.gmra.mxu1 %v82_v27 }
  0x86   :  { %v57_v28 = vpop.xlane.xlu0 %56 }
  0x87   :  { %387 = vrsqrt.f32 %v57_v28  ;;  %vm67_vm0 = vweird.f32 %v57_v28 }
  0x8d   :  { %v388_v30 = vpop.eup %387 }
  0x8e   :  { %v60_v29 = vpop.xlane.xlu0 %59  ;;  %v62_v31 = vmul.f32 %v388_v30, %v57_v28  ;;  %vm68_vm1 = vweird.f32 %v388_v30 }
  0x8f   :  { %389 = vrsqrt.f32 %v60_v29  ;;  %vm69_vm2 = vmor %vm67_vm0, %vm68_vm1  ;;  %vm77_vm3 = vweird.f32 %v60_v29 }
  0x90   :  { %v63_v32 = vmul.f32 %v388_v30, %v62_v31 }
  0x92   :  { %v64_v34 = vmul.f32 0.5, %v63_v32 }
  0x94   :  { %v65_v36 = vsub.f32 1.5, %v64_v34 }
  0x95   :  { %v390_v33 = vpop.eup %389 }
  0x96   :  { %v72_v35 = vmul.f32 %v390_v33, %v60_v29  ;;  %v66_v39 = vmul.f32 %v388_v30, %v65_v36  ;;  %vm78_vm4 = vweird.f32 %v390_v33 }
  0x97   :  { %vm79_vm5 = vmor %vm77_vm3, %vm78_vm4 }
  0x98   :  { %v73_v37 = vmul.f32 %v390_v33, %v72_v35  ;;  %v70_v45 = vsel %vm69_vm2, %v388_v30, %v66_v39 }
  0x9a   :  { %v74_v38 = vmul.f32 0.5, %v73_v37 }
  0x9c   :  { %v75_v44 = vsub.f32 1.5, %v74_v38 }
  0x9e   :  { %v76_v48 = vmul.f32 %v390_v33, %v75_v44 }
  0xa0   :  { %v80_v53 = vsel %vm79_vm5, %v390_v33, %v76_v48 }
  0xa9   :  { %v220_v40 = vpop.f32.mrf.mxu0 }
  0xaa   :  { %v234_v41 = vpop.f32.mrf.mxu1 }
  0xab   :  { %v235_v42 = vadd.f32 %v234_v41, %v220_v40 }
  0xad   :  { %v239_v46 = vmul.f32 %v235_v42, %v70_v45 }
  0xaf   :  { %v245_v47 = vadd.f32 %v386_v43, %v239_v46 }
  0xb1   :  { %v247_v49 = vmul.f32 %v245_v47, %v245_v47  ;;  %v222_v50 = vpop.f32.mrf.mxu0 }
  0xb2   :  { %v236_v51 = vpop.f32.mrf.mxu1 }
  0xb3   :  { %v237_v52 = vadd.f32 %v236_v51, %v222_v50  ;;  %249 = vadd.xlane.f32.xlu1 %v247_v49 }
  0xb5   :  { %v240_v54 = vmul.f32 %v237_v52, %v80_v53 }
  0xb7   :  { %v246_v55 = vadd.f32 %v386_v43, %v240_v54 }
  0xb9   :  { %v248_v56 = vmul.f32 %v246_v55, %v246_v55 }
  0xbb   :  { %251 = vadd.xlane.f32.xlu1 %v248_v56 }
 0x126   :  { %v250_v57 = vpop.xlane.xlu1 %249 }
 0x127   :  { %391 = vrsqrt.f32 %v250_v57  ;;  %vm259_vm7 = vweird.f32 %v250_v57 }
 0x12d   :  { %v392_v58 = vpop.eup %391 }
 0x12e   :  { %v254_v59 = vmul.f32 %v392_v58, %v250_v57  ;;  %v252_v60 = vpop.xlane.xlu1 %251  ;;  %vm260_vm6 = vweird.f32 %v392_v58 }
 0x12f   :  { %393 = vrsqrt.f32 %v252_v60  ;;  %vm261_vm8 = vmor %vm259_vm7, %vm260_vm6  ;;  %vm269_vm10 = vweird.f32 %v252_v60 }
 0x130   :  { %v255_v61 = vmul.f32 %v392_v58, %v254_v59 }
 0x132   :  { %v256_v62 = vmul.f32 0.5, %v255_v61 }
 0x134   :  { %v257_v63 = vsub.f32 1.5, %v256_v62 }
 0x135   :  { %v394_v0 = vpop.eup %393 }
 0x136   :  { %v258_v1 = vmul.f32 %v392_v58, %v257_v63  ;;  %v264_v2 = vmul.f32 %v394_v0, %v252_v60  ;;  %vm270_vm9 = vweird.f32 %v394_v0 }
 0x137   :  { %vm271_vm11 = vmor %vm269_vm10, %vm270_vm9 }
 0x138   :  { %v262_v3 = vsel %vm261_vm8, %v392_v58, %v258_v1  ;;  %v265_v4 = vmul.f32 %v394_v0, %v264_v2 }
 0x139   :  { %v273_v5 = vmul.f32 %v262_v3, %v245_v47 }
 0x13a   :  { %v266_v6 = vmul.f32 0.5, %v265_v4 }
 0x13b   :  { %275 = vst [vmem:[#allocation7] sm:$0xff] %v273_v5 }
 0x13c   :  { %v267_v7 = vsub.f32 1.5, %v266_v6 }
 0x13e   :  { %v268_v8 = vmul.f32 %v394_v0, %v267_v7 }
 0x140   :  { %v272_v9 = vsel %vm271_vm11, %v394_v0, %v268_v8 }
 0x141   :  { %v274_v10 = vmul.f32 %v272_v9, %v246_v55 }
 0x143   :  { %276 = vst [vmem:[#allocation7 + $0x8] sm:$0xff] %v274_v10 }
 0x144   :  { %289 = dma.vmem_to_hbm [thread:$0]  %s282_s26, 256, %s284_s29, [#allocation4], %s480_s30, %s480_s30, %s481_s4  }
 0x145   :  { %471 = dma.done.wait [#allocation4], 256  }
 0x146   :  { %472 = vsyncadd [#allocation4], 4294967040 }
 0x147   :  { %294 = vsyncpa [#allocation3], 1 }
 0x148   :  { %295 = vsyncpa [#allocation6], 1 }
 0x149   :  { %296 = vsyncpa [#allocation4], 1 }

</bundles_post_ra>
